<compile_context>
chip_gen: v5e
topology: v5e:2x2
jax: 0.10.0
libtpu: 0.0.40
codegen_flags: <defaults>
</compile_context>

<pallas_src>
from functools import partial

import jax
import jax.numpy as jnp
from jax.experimental import pallas as pl
from jax.experimental.pallas import tpu as pltpu


# ------------------------------ fused kernel --------------------------------

def _fused_cross_attn_kernel(clip_ref, dino_ref,
                             wq_ref, bq_ref,
                             wkv_ref, bkv_ref,
                             wo_ref, bo_ref,
                             o_ref, *, hidden_dim):
    clip = clip_ref[...]                                            # (B, Dc) f32

    # query = clip @ Wq^T + bq
    q = jnp.dot(clip, wq_ref[...], preferred_element_type=jnp.float32) + bq_ref[...]

    # folded dino path: [key | value] = dino @ W_kv_eff + b_kv_eff   (B, 2H)
    kv = (jnp.dot(dino_ref[...], wkv_ref[...], preferred_element_type=jnp.float32)
          + bkv_ref[...])
    k = kv[:, :hidden_dim]                                          # (B, H)
    v = kv[:, hidden_dim:]                                          # (B, H)

    # scores (B, B): contract last axes directly, no explicit k.T relayout
    s = jax.lax.dot_general(q, k, (((1,), (1,)), ((), ())),
                            preferred_element_type=jnp.float32)

    # numerically-stable softmax; normalize AFTER p @ v (fewer muls, EUP recip)
    m = jnp.max(s, axis=-1, keepdims=True)
    e = jnp.exp(s - m)
    denom = jnp.sum(e, axis=-1, keepdims=True)                      # (B, 1)
    attn = jnp.dot(e, v, preferred_element_type=jnp.float32)        # (B, H)
    attn = attn * pl.reciprocal(denom, approx=True)

    # fc_out + residual, lane-dense (B, Dc) store
    o_ref[...] = (jnp.dot(attn, wo_ref[...], preferred_element_type=jnp.float32)
                  + bo_ref[...] + clip)


# ------------------------------ wrapper (glue) -------------------------------

def cross_attention_v2_forward(clip_feats, dino_feats, params):
    """clip_feats: (B, clip_dim), dino_feats: (B, dino_dim)."""
    B, Dc = clip_feats.shape
    Dd = dino_feats.shape[1]
    H = params["w_q"].shape[0]
    f32 = jnp.float32

    # nn.Linear: y = x @ W^T + b. Fold dino_to_clip into key/value projections:
    #   key   = (dino @ Wdc^T + bdc) @ Wk^T + bk = dino @ (Wdc^T Wk^T) + (bdc Wk^T + bk)
    # and concatenate K/V so the dino path is a single matmul.
    w_dc_t = params["w_dc"].T.astype(f32)                     # (Dd, Dc)
    b_dc = params["b_dc"].astype(f32)                         # (Dc,)
    wk_t = params["w_k"].T.astype(f32)                        # (Dc, H)
    wv_t = params["w_v"].T.astype(f32)                        # (Dc, H)
    w_kv_eff = jnp.concatenate([w_dc_t @ wk_t, w_dc_t @ wv_t], axis=1)   # (Dd, 2H)
    b_kv_eff = jnp.concatenate(
        [b_dc @ wk_t + params["b_k"], b_dc @ wv_t + params["b_v"]]
    ).reshape(1, 2 * H).astype(f32)

    wq_t = params["w_q"].T.astype(f32)                        # (Dc, H)
    bq = params["b_q"].reshape(1, H).astype(f32)
    wo_t = params["w_o"].T.astype(f32)                        # (H, Dc)
    bo = params["b_o"].reshape(1, Dc).astype(f32)

    def full(shape):
        return pl.BlockSpec(shape, lambda i, _s=shape: (0,) * len(_s))

    kernel = partial(_fused_cross_attn_kernel, hidden_dim=H)
    return pl.pallas_call(
        kernel,
        out_shape=jax.ShapeDtypeStruct((B, Dc), f32),
        grid=(1,),
        in_specs=[
            full((B, Dc)), full((B, Dd)),
            full((Dc, H)), full((1, H)),
            full((Dd, 2 * H)), full((1, 2 * H)),
            full((H, Dc)), full((1, Dc)),
        ],
        out_specs=full((B, Dc)),
        compiler_params=pltpu.CompilerParams(
            dimension_semantics=("arbitrary",)),
    )(clip_feats.astype(f32), dino_feats.astype(f32),
      wq_t, bq, w_kv_eff, b_kv_eff, wo_t, bo)


# ------------------------- pure-JAX reference (unfolded) ---------------------

def cross_attention_v2_ref(clip_feats, dino_feats, params):
    dino_mapped = dino_feats @ params["w_dc"].T + params["b_dc"]
    query = clip_feats @ params["w_q"].T + params["b_q"]
    key = dino_mapped @ params["w_k"].T + params["b_k"]
    value = dino_mapped @ params["w_v"].T + params["b_v"]
    attn_w = jax.nn.softmax(query @ key.T, axis=-1)
    attn_out = attn_w @ value
    attn_out = attn_out @ params["w_o"].T + params["b_o"]
    return clip_feats + attn_out


# ---------------------------------- main -------------------------------------

if __name__ == "__main__":
    # Small shapes consistent with the module (scaled down from 512/1024/512),
    # chosen lane/sublane aligned: B=8, clip_dim=128, dino_dim=256, hidden_dim=128.
    B, clip_dim, dino_dim, hidden_dim = 8, 128, 256, 128

    key = jax.random.PRNGKey(0)
    ks = jax.random.split(key, 12)
    std = 0.02  # mimics reset(): weights ~ N(0, 0.02); use small random biases
                # (instead of zeros) to exercise the bias-folding path.
    params = {
        "w_dc": std * jax.random.normal(ks[0], (clip_dim, dino_dim), jnp.float32),
        "b_dc": std * jax.random.normal(ks[1], (clip_dim,), jnp.float32),
        "w_q": std * jax.random.normal(ks[2], (hidden_dim, clip_dim), jnp.float32),
        "b_q": std * jax.random.normal(ks[3], (hidden_dim,), jnp.float32),
        "w_k": std * jax.random.normal(ks[4], (hidden_dim, clip_dim), jnp.float32),
        "b_k": std * jax.random.normal(ks[5], (hidden_dim,), jnp.float32),
        "w_v": std * jax.random.normal(ks[6], (hidden_dim, clip_dim), jnp.float32),
        "b_v": std * jax.random.normal(ks[7], (hidden_dim,), jnp.float32),
        "w_o": std * jax.random.normal(ks[8], (clip_dim, hidden_dim), jnp.float32),
        "b_o": std * jax.random.normal(ks[9], (clip_dim,), jnp.float32),
    }

    clip_feats = jax.random.normal(ks[10], (B, clip_dim), jnp.float32)
    dino_feats = jax.random.normal(ks[11], (B, dino_dim), jnp.float32)

    fwd = jax.jit(cross_attention_v2_forward)
    out = jax.block_until_ready(fwd(clip_feats, dino_feats, params))

    ref = cross_attention_v2_ref(clip_feats, dino_feats, params)
    assert out.shape == (B, clip_dim)
    assert jnp.max(jnp.abs(out - ref)) < 1e-3, "mismatch vs pure-JAX reference"

    print("KERNEL_OK")
</pallas_src>

<mosaic_0001>
module attributes {stable_mosaic.version = 11 : i64} {
  func.func @_fused_cross_attn_kernel(%arg0: i32, %arg1: memref<8x128xf32, #tpu.memory_space<vmem>>, %arg2: memref<8x256xf32, #tpu.memory_space<vmem>>, %arg3: memref<128x128xf32, #tpu.memory_space<vmem>>, %arg4: memref<1x128xf32, #tpu.memory_space<vmem>>, %arg5: memref<256x256xf32, #tpu.memory_space<vmem>>, %arg6: memref<1x256xf32, #tpu.memory_space<vmem>>, %arg7: memref<128x128xf32, #tpu.memory_space<vmem>>, %arg8: memref<1x128xf32, #tpu.memory_space<vmem>>, %arg9: memref<8x128xf32, #tpu.memory_space<vmem>>) attributes {dimension_semantics = [#tpu.dimension_semantics<arbitrary>], iteration_bounds = array<i64: 1>, scalar_prefetch = 0 : i64, scratch_operands = 0 : i64, tpu.core_type = #tpu.core_type<tc>, window_params = [{pipeline_mode = #tpu.pipeline_mode<synchronous>, transform_indices = @transform_0, window_bounds = array<i64: 8, 128>}, {pipeline_mode = #tpu.pipeline_mode<synchronous>, transform_indices = @transform_1, window_bounds = array<i64: 8, 256>}, {pipeline_mode = #tpu.pipeline_mode<synchronous>, transform_indices = @transform_2, window_bounds = array<i64: 128, 128>}, {pipeline_mode = #tpu.pipeline_mode<synchronous>, transform_indices = @transform_3, window_bounds = array<i64: 1, 128>}, {pipeline_mode = #tpu.pipeline_mode<synchronous>, transform_indices = @transform_4, window_bounds = array<i64: 256, 256>}, {pipeline_mode = #tpu.pipeline_mode<synchronous>, transform_indices = @transform_5, window_bounds = array<i64: 1, 256>}, {pipeline_mode = #tpu.pipeline_mode<synchronous>, transform_indices = @transform_6, window_bounds = array<i64: 128, 128>}, {pipeline_mode = #tpu.pipeline_mode<synchronous>, transform_indices = @transform_7, window_bounds = array<i64: 1, 128>}, {pipeline_mode = #tpu.pipeline_mode<synchronous>, transform_indices = @transform_8, window_bounds = array<i64: 8, 128>}]} {
    %c0 = arith.constant 0 : index
    %c0_0 = arith.constant 0 : index
    %0 = vector.load %arg1[%c0, %c0_0] : memref<8x128xf32, #tpu.memory_space<vmem>>, vector<8x128xf32>
    %c0_1 = arith.constant 0 : index
    %c0_2 = arith.constant 0 : index
    %1 = vector.load %arg3[%c0_1, %c0_2] : memref<128x128xf32, #tpu.memory_space<vmem>>, vector<128x128xf32>
    %cst = arith.constant dense<0.000000e+00> : vector<8x128xf32>
    %2 = tpu.matmul %0, %1, %cst {dimension_numbers = #tpu.dot_dimension_numbers<[1], [0], [0], [1], [0, 0, 1, 1], [], []>} : vector<8x128xf32>, vector<128x128xf32>, vector<8x128xf32> -> vector<8x128xf32>
    %c0_3 = arith.constant 0 : index
    %c0_4 = arith.constant 0 : index
    %3 = vector.load %arg4[%c0_3, %c0_4] : memref<1x128xf32, #tpu.memory_space<vmem>>, vector<1x128xf32>
    %4 = vector.broadcast %3 : vector<1x128xf32> to vector<8x128xf32>
    %5 = arith.addf %2, %4 : vector<8x128xf32>
    %c0_5 = arith.constant 0 : index
    %c0_6 = arith.constant 0 : index
    %6 = vector.load %arg2[%c0_5, %c0_6] : memref<8x256xf32, #tpu.memory_space<vmem>>, vector<8x256xf32>
    %c0_7 = arith.constant 0 : index
    %c0_8 = arith.constant 0 : index
    %7 = vector.load %arg5[%c0_7, %c0_8] : memref<256x256xf32, #tpu.memory_space<vmem>>, vector<256x256xf32>
    %cst_9 = arith.constant dense<0.000000e+00> : vector<8x256xf32>
    %8 = tpu.matmul %6, %7, %cst_9 {dimension_numbers = #tpu.dot_dimension_numbers<[1], [0], [0], [1], [0, 0, 1, 1], [], []>} : vector<8x256xf32>, vector<256x256xf32>, vector<8x256xf32> -> vector<8x256xf32>
    %c0_10 = arith.constant 0 : index
    %c0_11 = arith.constant 0 : index
    %9 = vector.load %arg6[%c0_10, %c0_11] : memref<1x256xf32, #tpu.memory_space<vmem>>, vector<1x256xf32>
    %10 = vector.broadcast %9 : vector<1x256xf32> to vector<8x256xf32>
    %11 = arith.addf %8, %10 : vector<8x256xf32>
    %12 = vector.extract_strided_slice %11 {offsets = [0, 0], sizes = [8, 128], strides = [1, 1]} : vector<8x256xf32> to vector<8x128xf32>
    %13 = vector.extract_strided_slice %11 {offsets = [0, 128], sizes = [8, 128], strides = [1, 1]} : vector<8x256xf32> to vector<8x128xf32>
    %cst_12 = arith.constant dense<0.000000e+00> : vector<8x8xf32>
    %14 = tpu.matmul %5, %12, %cst_12 {dimension_numbers = #tpu.dot_dimension_numbers<[1], [1], [0], [0], [0, 0, 1, 0], [], []>} : vector<8x128xf32>, vector<8x128xf32>, vector<8x8xf32> -> vector<8x8xf32>
    %cst_13 = arith.constant dense<0xFF800000> : vector<8xf32>
    %15 = vector.multi_reduction <maximumf>, %14, %cst_13 [1] : vector<8x8xf32> to vector<8xf32>
    %16 = vector.shape_cast %15 : vector<8xf32> to vector<8x1xf32>
    %17 = vector.broadcast %16 : vector<8x1xf32> to vector<8x8xf32>
    %18 = arith.subf %14, %17 : vector<8x8xf32>
    %19 = math.exp %18 : vector<8x8xf32>
    %cst_14 = arith.constant dense<0.000000e+00> : vector<8xf32>
    %20 = vector.multi_reduction <add>, %19, %cst_14 [1] : vector<8x8xf32> to vector<8xf32>
    %21 = vector.shape_cast %20 : vector<8xf32> to vector<8x1xf32>
    %cst_15 = arith.constant dense<0.000000e+00> : vector<8x128xf32>
    %22 = tpu.matmul %19, %13, %cst_15 {dimension_numbers = #tpu.dot_dimension_numbers<[1], [0], [0], [1], [0, 0, 1, 1], [], []>} : vector<8x8xf32>, vector<8x128xf32>, vector<8x128xf32> -> vector<8x128xf32>
    %23 = tpu.reciprocal %21 {approx = true} : vector<8x1xf32> -> vector<8x1xf32>
    %24 = vector.broadcast %23 : vector<8x1xf32> to vector<8x128xf32>
    %25 = arith.mulf %22, %24 : vector<8x128xf32>
    %c0_16 = arith.constant 0 : index
    %c0_17 = arith.constant 0 : index
    %26 = vector.load %arg7[%c0_16, %c0_17] : memref<128x128xf32, #tpu.memory_space<vmem>>, vector<128x128xf32>
    %cst_18 = arith.constant dense<0.000000e+00> : vector<8x128xf32>
    %27 = tpu.matmul %25, %26, %cst_18 {dimension_numbers = #tpu.dot_dimension_numbers<[1], [0], [0], [1], [0, 0, 1, 1], [], []>} : vector<8x128xf32>, vector<128x128xf32>, vector<8x128xf32> -> vector<8x128xf32>
    %c0_19 = arith.constant 0 : index
    %c0_20 = arith.constant 0 : index
    %28 = vector.load %arg8[%c0_19, %c0_20] : memref<1x128xf32, #tpu.memory_space<vmem>>, vector<1x128xf32>
    %29 = vector.broadcast %28 : vector<1x128xf32> to vector<8x128xf32>
    %30 = arith.addf %27, %29 : vector<8x128xf32>
    %31 = arith.addf %30, %0 : vector<8x128xf32>
    %c0_21 = arith.constant 0 : index
    %c0_22 = arith.constant 0 : index
    %32 = vector.load %arg9[%c0_21, %c0_22] : memref<8x128xf32, #tpu.memory_space<vmem>>, vector<8x128xf32>
    tpu.vector_store %arg9[%c0_21, %c0_22], %31 {strides = array<i32>} : memref<8x128xf32, #tpu.memory_space<vmem>>, vector<8x128xf32>,
    return
  }
  func.func @transform_0(%arg0: i32) -> (i32, i32) {
    %c0_i32 = arith.constant 0 : i32
    %c0_i32_0 = arith.constant 0 : i32
    %c0_i32_1 = arith.constant 0 : i32
    return %c0_i32, %c0_i32_0 : i32, i32
  }
  func.func @transform_1(%arg0: i32) -> (i32, i32) {
    %c0_i32 = arith.constant 0 : i32
    %c0_i32_0 = arith.constant 0 : i32
    %c0_i32_1 = arith.constant 0 : i32
    return %c0_i32, %c0_i32_0 : i32, i32
  }
  func.func @transform_2(%arg0: i32) -> (i32, i32) {
    %c0_i32 = arith.constant 0 : i32
    %c0_i32_0 = arith.constant 0 : i32
    %c0_i32_1 = arith.constant 0 : i32
    return %c0_i32, %c0_i32_0 : i32, i32
  }
  func.func @transform_3(%arg0: i32) -> (i32, i32) {
    %c0_i32 = arith.constant 0 : i32
    %c0_i32_0 = arith.constant 0 : i32
    %c0_i32_1 = arith.constant 0 : i32
    return %c0_i32, %c0_i32_0 : i32, i32
  }
  func.func @transform_4(%arg0: i32) -> (i32, i32) {
    %c0_i32 = arith.constant 0 : i32
    %c0_i32_0 = arith.constant 0 : i32
    %c0_i32_1 = arith.constant 0 : i32
    return %c0_i32, %c0_i32_0 : i32, i32
  }
  func.func @transform_5(%arg0: i32) -> (i32, i32) {
    %c0_i32 = arith.constant 0 : i32
    %c0_i32_0 = arith.constant 0 : i32
    %c0_i32_1 = arith.constant 0 : i32
    return %c0_i32, %c0_i32_0 : i32, i32
  }
  func.func @transform_6(%arg0: i32) -> (i32, i32) {
    %c0_i32 = arith.constant 0 : i32
    %c0_i32_0 = arith.constant 0 : i32
    %c0_i32_1 = arith.constant 0 : i32
    return %c0_i32, %c0_i32_0 : i32, i32
  }
  func.func @transform_7(%arg0: i32) -> (i32, i32) {
    %c0_i32 = arith.constant 0 : i32
    %c0_i32_0 = arith.constant 0 : i32
    %c0_i32_1 = arith.constant 0 : i32
    return %c0_i32, %c0_i32_0 : i32, i32
  }
  func.func @transform_8(%arg0: i32) -> (i32, i32) {
    %c0_i32 = arith.constant 0 : i32
    %c0_i32_0 = arith.constant 0 : i32
    %c0_i32_1 = arith.constant 0 : i32
    return %c0_i32, %c0_i32_0 : i32, i32
  }
}

</mosaic_0001>

<bundles_post_ra>
// kernel: cross_attention_v2_forward.1
= control target key start
LH: loop header
LB: loop body
LE: loop exit
PB: predicated region body
PF: predicated region fallthrough
CT: control target
= control target key end

     0   :  { %s740_s0 = inlined_call_operand.vmem [shape: f32[8,128], index: 0, kind: input, shape index: {}]   ;;  %s741_s1 = inlined_call_operand.vmem [shape: f32[8,256], index: 1, kind: input, shape index: {}]   ;;  %s742_s2 = inlined_call_operand.vmem [shape: f32[128,128], index: 2, kind: input, shape index: {}]   ;;  %s743_s3 = inlined_call_operand.vmem [shape: f32[1,128], index: 3, kind: input, shape index: {}]   ;;  %s744_s4 = inlined_call_operand.vmem [shape: f32[256,256], index: 4, kind: input, shape index: {}]   ;;  %s745_s5 = inlined_call_operand.vmem [shape: f32[1,256], index: 5, kind: input, shape index: {}]   ;;  %s746_s6 = inlined_call_operand.vmem [shape: f32[128,128], index: 6, kind: input, shape index: {}]   ;;  %s747_s7 = inlined_call_operand.vmem [shape: f32[1,128], index: 7, kind: input, shape index: {}]   ;;  %s748_s8 = inlined_call_operand.hbm [shape: f32[8,128], index: 8, kind: output, shape index: {}]  }
   0x1   :  { %v135_v0 = vld [vmem:[%s744_s4 + $0x1f0] sm:$0xff]  ;;  %v133_v1 = vld [vmem:[%s744_s4 + $0x1e0] sm:$0xff]  ;;  %v46_v6 = vld [vmem:[%s742_s2 + $0x78] sm:$0xff] }
   0x2   :  { %v103_v2 = vld [vmem:[%s744_s4 + $0xf0] sm:$0xff]  ;;  %163 = vmatpush.msra.mxu2 %v135_v0  ;;  %v101_v3 = vld [vmem:[%s744_s4 + $0xe0] sm:$0xff]  ;;  %51 = vmatpush.msra.mxu0 %v46_v6  ;;  %v44_v10 = vld [vmem:[%s742_s2 + $0x68] sm:$0xff] }
   0x3   :  { %143 = vmatpush.msra.mxu1 %v103_v2  ;;  %v131_v4 = vld [vmem:[%s744_s4 + $0x1d0] sm:$0xff]  ;;  %v129_v8 = vld [vmem:[%s744_s4 + $0x1c0] sm:$0xff]  ;;  %v42_v16 = vld [vmem:[%s742_s2 + $0x58] sm:$0xff] }
   0x4   :  { %v99_v5 = vld [vmem:[%s744_s4 + $0xd0] sm:$0xff]  ;;  %164 = vmatpush.msra.mxu2 %v133_v1  ;;  %v97_v9 = vld [vmem:[%s744_s4 + $0xc0] sm:$0xff]  ;;  %v40_v22 = vld [vmem:[%s742_s2 + $0x48] sm:$0xff] }
   0x5   :  { %144 = vmatpush.msra.mxu1 %v101_v3  ;;  %v45_v7 = vld [vmem:[%s742_s2 + $0x70] sm:$0xff]  ;;  %v43_v13 = vld [vmem:[%s742_s2 + $0x60] sm:$0xff]  ;;  %v38_v28 = vld [vmem:[%s742_s2 + $0x38] sm:$0xff] }
   0x6   :  { %165 = vmatpush.msra.mxu2 %v131_v4  ;;  %v127_v11 = vld [vmem:[%s744_s4 + $0x1b0] sm:$0xff]  ;;  %52 = vmatpush.msra.mxu0 %v45_v7  ;;  %v125_v14 = vld [vmem:[%s744_s4 + $0x1a0] sm:$0xff] }
   0x7   :  { %145 = vmatpush.msra.mxu1 %v99_v5  ;;  %v95_v12 = vld [vmem:[%s744_s4 + $0xb0] sm:$0xff]  ;;  %v93_v15 = vld [vmem:[%s744_s4 + $0xa0] sm:$0xff] }
   0x8   :  { %166 = vmatpush.msra.mxu2 %v129_v8  ;;  %53 = vmatpush.msra.mxu0 %v44_v10  ;;  %v123_v17 = vld [vmem:[%s744_s4 + $0x190] sm:$0xff]  ;;  %v121_v20 = vld [vmem:[%s744_s4 + $0x180] sm:$0xff] }
   0x9   :  { %146 = vmatpush.msra.mxu1 %v97_v9  ;;  %v91_v18 = vld [vmem:[%s744_s4 + $0x90] sm:$0xff]  ;;  %v89_v21 = vld [vmem:[%s744_s4 + $0x80] sm:$0xff] }
   0xa   :  { %167 = vmatpush.msra.mxu2 %v127_v11  ;;  %54 = vmatpush.msra.mxu0 %v43_v13  ;;  %v41_v19 = vld [vmem:[%s742_s2 + $0x50] sm:$0xff]  ;;  %v39_v25 = vld [vmem:[%s742_s2 + $0x40] sm:$0xff] }
   0xb   :  { %147 = vmatpush.msra.mxu1 %v95_v12  ;;  %v119_v23 = vld [vmem:[%s744_s4 + $0x170] sm:$0xff]  ;;  %v117_v26 = vld [vmem:[%s744_s4 + $0x160] sm:$0xff] }
   0xc   :  { %168 = vmatpush.msra.mxu2 %v125_v14  ;;  %55 = vmatpush.msra.mxu0 %v42_v16  ;;  %v87_v24 = vld [vmem:[%s744_s4 + $0x70] sm:$0xff]  ;;  %v85_v27 = vld [vmem:[%s744_s4 + $0x60] sm:$0xff] }
   0xd   :  { %148 = vmatpush.msra.mxu1 %v93_v15  ;;  %v115_v29 = vld [vmem:[%s744_s4 + $0x150] sm:$0xff] }
   0xe   :  { %169 = vmatpush.msra.mxu2 %v123_v17  ;;  %56 = vmatpush.msra.mxu0 %v41_v19  ;;  %v83_v30 = vld [vmem:[%s744_s4 + $0x50] sm:$0xff] }
   0xf   :  { %149 = vmatpush.msra.mxu1 %v91_v18 }
  0x10   :  { %170 = vmatpush.msra.mxu2 %v121_v20  ;;  %57 = vmatpush.msra.mxu0 %v40_v22 }
  0x11   :  { %150 = vmatpush.msra.mxu1 %v89_v21 }
  0x12   :  { %171 = vmatpush.msra.mxu2 %v119_v23  ;;  %58 = vmatpush.msra.mxu0 %v39_v25 }
  0x13   :  { %151 = vmatpush.msra.mxu1 %v87_v24 }
  0x14   :  { %13 = vsyncpa [#allocation3], 0  ;;  %172 = vmatpush.msra.mxu2 %v117_v26  ;;  %v37_v31 = vld [vmem:[%s742_s2 + $0x30] sm:$0xff]  ;;  %v113_v32 = vld [vmem:[%s744_s4 + $0x140] sm:$0xff]  ;;  %59 = vmatpush.msra.mxu0 %v38_v28  ;;  %vm243_vm0 = vcmask 64512   ;;  %s327_s18 = sshll.u32 %s748_s8, 4  ;;  %s328_s18 = int_to_ptr.hbm [resolvable:$true] %s327_s18 }
  0x15   :  { %152 = vmatpush.msra.mxu1 %v85_v27  ;;  %v81_v33 = vld [vmem:[%s744_s4 + $0x40] sm:$0xff]  ;;  %v36_v34 = vld [vmem:[%s742_s2 + $0x28] sm:$0xff]  ;;  %v111_v35 = vld [vmem:[%s744_s4 + $0x130] sm:$0xff] }
  0x16   :  { %173 = vmatpush.msra.mxu2 %v115_v29  ;;  %60 = vmatpush.msra.mxu0 %v37_v31  ;;  %v79_v36 = vld [vmem:[%s744_s4 + $0x30] sm:$0xff]  ;;  %v35_v37 = vld [vmem:[%s742_s2 + $0x20] sm:$0xff]  ;;  %v34_v40 = vld [vmem:[%s742_s2 + $0x18] sm:$0xff] }
  0x17   :  { %153 = vmatpush.msra.mxu1 %v83_v30  ;;  %v109_v38 = vld [vmem:[%s744_s4 + $0x120] sm:$0xff]  ;;  %v107_v41 = vld [vmem:[%s744_s4 + $0x110] sm:$0xff]  ;;  %v557_v46 = vld [vmem:[%s741_s1 + $0x8] sm:$0xff] }
  0x18   :  { %174 = vmatpush.msra.mxu2 %v113_v32  ;;  %61 = vmatpush.msra.mxu0 %v36_v34  ;;  %v77_v39 = vld [vmem:[%s744_s4 + $0x20] sm:$0xff]  ;;  %v75_v42 = vld [vmem:[%s744_s4 + $0x10] sm:$0xff]  ;;  %v32_v48 = vld [vmem:[%s742_s2 + $0x8] sm:$0xff] }
  0x19   :  { %154 = vmatpush.msra.mxu1 %v81_v33  ;;  %v33_v43 = vld [vmem:[%s742_s2 + $0x10] sm:$0xff]  ;;  %v105_v44 = vld [vmem:[%s744_s4 + $0x100] sm:$0xff]  ;;  %v104_v51 = vld [vmem:[%s744_s4 + $0xf8] sm:$0xff] }
  0x1a   :  { %175 = vmatpush.msra.mxu2 %v111_v35  ;;  %62 = vmatpush.msra.mxu0 %v35_v37  ;;  %v73_v45 = vld [vmem:[%s744_s4] sm:$0xff]  ;;  %v102_v52 = vld [vmem:[%s744_s4 + $0xe8] sm:$0xff]  ;;  %v136_v53 = vld [vmem:[%s744_s4 + $0x1f8] sm:$0xff] }
  0x1b   :  { %155 = vmatpush.msra.mxu1 %v79_v36  ;;  %v562_v47 = vld [vmem:[%s741_s1] sm:$0xff]  ;;  %183 = vmatpush.msra.mxu3 %v104_v51  ;;  %v100_v54 = vld [vmem:[%s744_s4 + $0xd8] sm:$0xff]  ;;  %v134_v55 = vld [vmem:[%s744_s4 + $0x1e8] sm:$0xff] }
  0x1c   :  { %176 = vmatpush.msra.mxu2 %v109_v38  ;;  %63 = vmatpush.msra.mxu0 %v34_v40  ;;  %v31_v49 = vld [vmem:[%s742_s2] sm:$0xff]  ;;  %v132_v56 = vld [vmem:[%s744_s4 + $0x1d8] sm:$0xff]  ;;  %v98_v57 = vld [vmem:[%s744_s4 + $0xc8] sm:$0xff] }
  0x1d   :  { %156 = vmatpush.msra.mxu1 %v77_v39  ;;  %v575_v50 = vld [vmem:[%s740_s0] sm:$0xff]  ;;  %184 = vmatpush.msra.mxu3 %v102_v52  ;;  %v130_v58 = vld [vmem:[%s744_s4 + $0x1c8] sm:$0xff]  ;;  %v96_v59 = vld [vmem:[%s744_s4 + $0xb8] sm:$0xff] }
  0x1e   :  { %177 = vmatpush.msra.mxu2 %v107_v41  ;;  %64 = vmatpush.msra.mxu0 %v33_v43  ;;  %v128_v60 = vld [vmem:[%s744_s4 + $0x1b8] sm:$0xff]  ;;  %v94_v61 = vld [vmem:[%s744_s4 + $0xa8] sm:$0xff]  ;;  %v137_v5 = vld [vmem:[%s745_s5] sm:$0x3]  ;;  %s370_s5 = smov [#allocation2]  }
  0x1f   :  { %157 = vmatpush.msra.mxu1 %v75_v42  ;;  %185 = vmatpush.msra.mxu3 %v100_v54  ;;  %v126_v62 = vld [vmem:[%s744_s4 + $0x1a8] sm:$0xff]  ;;  %v92_v63 = vld [vmem:[%s744_s4 + $0x98] sm:$0xff]  ;;  %v139_v9 = vperm.slane %v137_v5, 0  ;;  %v338_v17 = vld [vmem:[%s743_s3] ss:$0 sm:$0xff]  ;;  %v140_v30 = vperm.slane %v137_v5, 1 }
  0x20   :  { %178 = vmatpush.msra.mxu2 %v105_v44  ;;  %65 = vmatpush.msra.mxu0 %v32_v48  ;;  %v124_v0 = vld [vmem:[%s744_s4 + $0x198] sm:$0xff]  ;;  %v90_v1 = vld [vmem:[%s744_s4 + $0x88] sm:$0xff]  ;;  %v292_v36 = vld [vmem:[%s746_s6 + $0x70] sm:$0xff]  ;;  %s325_s15 = sshll.u32 %s370_s5, 4  ;;  %s326_s15 = int_to_ptr.vmem [resolvable:$true] %s325_s15 }
  0x21   :  { %158 = vmatpush.msra.mxu1 %v73_v45  ;;  %179 = vmatmul.f32.vlgmr.msra.gmra.mxu2 %v557_v46  ;;  %v122_v2 = vld [vmem:[%s744_s4 + $0x188] sm:$0xff]  ;;  %v88_v3 = vld [vmem:[%s744_s4 + $0x78] sm:$0xff]  ;;  %v290_v38 = vld [vmem:[%s746_s6 + $0x60] sm:$0xff] }
  0x22   :  { %159 = vmatmul.f32.vlgmr.msra.gmra.mxu1 %v562_v47  ;;  %66 = vmatpush.msra.mxu0 %v31_v49  ;;  %v120_v4 = vld [vmem:[%s744_s4 + $0x178] sm:$0xff]  ;;  %v86_v6 = vld [vmem:[%s744_s4 + $0x68] sm:$0xff]  ;;  %v288_v40 = vld [vmem:[%s746_s6 + $0x50] sm:$0xff] }
  0x23   :  { %67 = vmatmul.f32.vlgmr.msra.gmra.mxu0 %v575_v50  ;;  %186 = vmatpush.msra.mxu3 %v98_v57  ;;  %v118_v7 = vld [vmem:[%s744_s4 + $0x168] sm:$0xff]  ;;  %v84_v8 = vld [vmem:[%s744_s4 + $0x58] sm:$0xff]  ;;  %v284_v49 = vld [vmem:[%s746_s6 + $0x30] sm:$0xff] }
  0x24   :  { %203 = vmatpush.msrb.mxu0 %v136_v53  ;;  %v116_v10 = vld [vmem:[%s744_s4 + $0x158] sm:$0xff]  ;;  %v82_v12 = vld [vmem:[%s744_s4 + $0x48] sm:$0xff]  ;;  %v282_v52 = vld [vmem:[%s746_s6 + $0x20] sm:$0xff] }
  0x25   :  { %187 = vmatpush.msra.mxu3 %v96_v59  ;;  %v114_v13 = vld [vmem:[%s744_s4 + $0x148] sm:$0xff]  ;;  %v80_v14 = vld [vmem:[%s744_s4 + $0x38] sm:$0xff]  ;;  %v280_v54 = vld [vmem:[%s746_s6 + $0x10] sm:$0xff] }
  0x26   :  { %204 = vmatpush.msrb.mxu0 %v134_v55  ;;  %v112_v16 = vld [vmem:[%s744_s4 + $0x138] sm:$0xff]  ;;  %v78_v18 = vld [vmem:[%s744_s4 + $0x28] sm:$0xff] }
  0x27   :  { %188 = vmatpush.msra.mxu3 %v94_v61  ;;  %v110_v20 = vld [vmem:[%s744_s4 + $0x128] sm:$0xff]  ;;  %v76_v22 = vld [vmem:[%s744_s4 + $0x18] sm:$0xff]  ;;  %v339_v61 = vld [vmem:[%s747_s7] ss:$0 sm:$0xff] }
  0x28   :  { %205 = vmatpush.msrb.mxu0 %v132_v56  ;;  %v108_v24 = vld [vmem:[%s744_s4 + $0x118] sm:$0xff]  ;;  %v74_v26 = vld [vmem:[%s744_s4 + $0x8] sm:$0xff]  ;;  %v278_v56 = vld [vmem:[%s746_s6] sm:$0xff] }
  0x29   :  { %189 = vmatpush.msra.mxu3 %v92_v63  ;;  %v106_v27 = vld [vmem:[%s744_s4 + $0x108] sm:$0xff]  ;;  %v293_v35 = vld [vmem:[%s746_s6 + $0x78] sm:$0xff] }
  0x2a   :  { %206 = vmatpush.msrb.mxu0 %v130_v58  ;;  %v291_v37 = vld [vmem:[%s746_s6 + $0x68] sm:$0xff]  ;;  %v289_v39 = vld [vmem:[%s746_s6 + $0x58] sm:$0xff] }
  0x2b   :  { %190 = vmatpush.msra.mxu3 %v90_v1  ;;  %v287_v41 = vld [vmem:[%s746_s6 + $0x48] sm:$0xff]  ;;  %v285_v48 = vld [vmem:[%s746_s6 + $0x38] sm:$0xff] }
  0x2c   :  { %207 = vmatpush.msrb.mxu0 %v128_v60  ;;  %v283_v51 = vld [vmem:[%s746_s6 + $0x28] sm:$0xff]  ;;  %v281_v53 = vld [vmem:[%s746_s6 + $0x18] sm:$0xff] }
  0x2d   :  { %191 = vmatpush.msra.mxu3 %v88_v3  ;;  %v279_v55 = vld [vmem:[%s746_s6 + $0x8] sm:$0xff] }
  0x2e   :  { %208 = vmatpush.msrb.mxu0 %v126_v62 }
  0x2f   :  { %192 = vmatpush.msra.mxu3 %v86_v6 }
  0x30   :  { %209 = vmatpush.msrb.mxu0 %v124_v0 }
  0x31   :  { %193 = vmatpush.msra.mxu3 %v84_v8 }
  0x32   :  { %210 = vmatpush.msrb.mxu0 %v122_v2 }
  0x33   :  { %194 = vmatpush.msra.mxu3 %v82_v12 }
  0x34   :  { %211 = vmatpush.msrb.mxu0 %v120_v4 }
  0x35   :  { %195 = vmatpush.msra.mxu3 %v80_v14 }
  0x36   :  { %212 = vmatpush.msrb.mxu0 %v118_v7 }
  0x37   :  { %196 = vmatpush.msra.mxu3 %v78_v18 }
  0x38   :  { %213 = vmatpush.msrb.mxu0 %v116_v10 }
  0x39   :  { %197 = vmatpush.msra.mxu3 %v76_v22 }
  0x3a   :  { %214 = vmatpush.msrb.mxu0 %v114_v13 }
  0x3b   :  { %198 = vmatpush.msra.mxu3 %v74_v26 }
  0x3c   :  { %215 = vmatpush.msrb.mxu0 %v112_v16  ;;  %199 = vmatmul.f32.vlgmr.msra.gmra.mxu3 %v562_v47  ;;  %v286_v47 = vld [vmem:[%s746_s6 + $0x40] sm:$0xff] }
  0x3d   :  { %298 = vmatpush.msrb.mxu3 %v293_v35 }
  0x3e   :  { %216 = vmatpush.msrb.mxu0 %v110_v20 }
  0x3f   :  { %299 = vmatpush.msrb.mxu3 %v292_v36 }
  0x40   :  { %217 = vmatpush.msrb.mxu0 %v108_v24 }
  0x41   :  { %300 = vmatpush.msrb.mxu3 %v291_v37 }
  0x42   :  { %218 = vmatpush.msrb.mxu0 %v106_v27 }
  0x43   :  { %219 = vmatmul.f32.vlgmr.msrb.gmra.mxu0 %v557_v46  ;;  %301 = vmatpush.msrb.mxu3 %v290_v38 }
  0x45   :  { %302 = vmatpush.msrb.mxu3 %v289_v39 }
  0x47   :  { %303 = vmatpush.msrb.mxu3 %v288_v40 }
  0x49   :  { %304 = vmatpush.msrb.mxu3 %v287_v41 }
  0x4b   :  { %305 = vmatpush.msrb.mxu3 %v286_v47 }
  0x4d   :  { %306 = vmatpush.msrb.mxu3 %v285_v48 }
  0x4f   :  { %307 = vmatpush.msrb.mxu3 %v284_v49 }
  0x51   :  { %308 = vmatpush.msrb.mxu3 %v283_v51 }
  0x53   :  { %309 = vmatpush.msrb.mxu3 %v282_v52 }
  0x55   :  { %310 = vmatpush.msrb.mxu3 %v281_v53 }
  0x57   :  { %311 = vmatpush.msrb.mxu3 %v280_v54 }
  0x59   :  { %312 = vmatpush.msrb.mxu3 %v279_v55 }
  0x5b   :  { %313 = vmatpush.msrb.mxu3 %v278_v56 }
  0x9f   :  { %v160_v11 = vpop.f32.mrf.mxu1 }
  0xa0   :  { %v161_v15 = vadd.f32 %v160_v11, %v139_v9  ;;  %v68_v19 = vpop.f32.mrf.mxu0 }
  0xa1   :  { %v69_v25 = vadd.f32 %v338_v17, %v68_v19 }
  0xa4   :  { %v180_v21 = vpop.f32.mrf.mxu2 }
  0xa5   :  { %v181_v23 = vadd.f32 %v180_v21, %v161_v15 }
  0xa7   :  { %238 = vmatpush.xpose.msrb.mxu1 %v181_v23 }
  0xaa   :  { %239 = vmatmul.f32.vlgmr.msrb.gmra.mxu1 %v69_v25 }
  0xbf   :  { %v200_v31 = vpop.f32.mrf.mxu3 }
  0xc0   :  { %v220_v32 = vpop.f32.mrf.mxu0  ;;  %v201_v33 = vadd.f32 %v200_v31, %v140_v30 }
  0xc2   :  { %v221_v34 = vadd.f32 %v220_v32, %v201_v33 }
  0xc4   :  { %271 = vmatpush.msrb.mxu2 %v221_v34 }
 0x127   :  { %v240_v28 = vpop.f32.mrf.mxu1 }
 0x128   :  { %v244_v29 = vsel %vm243_vm0, %v240_v28, -inf }
 0x129   :  { %245 = vmax.xlane.f32.xlu0 %v244_v29 }
 0x19c   :  { %v246_v42 = vpop.xlane.xlu0 %245 }
 0x19d   :  { %v247_v43 = vsub.f32 %v240_v28, %v246_v42 }
 0x19f   :  { %v248_v44 = vmul.f32 1.442695, %v247_v43 }
 0x1a1   :  { %340 = vpow2.f32 %v248_v44 }
 0x1a7   :  { %v341_v45 = vpop.eup %340 }
 0x1a8   :  { %336 = vmatmul.msk.f32.vlgmr.msrb.gmra.mxu2 %vm243_vm0, %v341_v45  ;;  %v250_v46 = vsel %vm243_vm0, %v341_v45, 0.0 }
 0x1a9   :  { %251 = vadd.xlane.f32.xlu0 %v250_v46 }
 0x21c   :  { %v252_v57 = vpop.xlane.xlu0 %251 }
 0x21d   :  { %342 = vrcp.f32 %v252_v57 }
 0x223   :  { %v343_v58 = vpop.eup %342 }
 0x22b   :  { %v273_v59 = vpop.f32.mrf.mxu2 }
 0x22c   :  { %v277_v60 = vmul.f32 %v343_v58, %v273_v59 }
 0x22e   :  { %314 = vmatmul.f32.vlgmr.msrb.gmra.mxu3 %v277_v60 }
 0x2b1   :  { %v315_v62 = vpop.f32.mrf.mxu3 }
 0x2b2   :  { %v316_v63 = vadd.f32 %v339_v61, %v315_v62 }
 0x2b4   :  { %v318_v0 = vadd.f32 %v316_v63, %v575_v50 }
 0x2b6   :  { %319 = vst [vmem:[#allocation2] sm:$0xff] %v318_v0 }
 0x2b7   :  { %330 = dma.vmem_to_hbm [thread:$0]  %s326_s15, 128, %s328_s18, [#allocation3]  }
 0x2b8   :  { %368 = dma.done.wait [#allocation3], 128  }
 0x2b9   :  { %369 = vsyncadd [#allocation3], 4294967168 }
 0x2ba   :  { %335 = vsyncpa [#allocation3], 1 }

</bundles_post_ra>
